<compile_context>
chip_gen: v7x
topology: tpu7x:2x2x1
jax: 0.10.0
libtpu: 0.0.40
codegen_flags: <defaults>
</compile_context>

<pallas_src>
import jax
import jax.numpy as jnp
from jax.experimental import pallas as pl
from jax.experimental.pallas import tpu as pltpu

# ----- hyperparameters mirroring TextTransformer.__init__ -----
INPUT_DIM = 32          # input_dim
D_MODEL = 128           # feature_extractor output / transformer d_model
NUM_HEADS = 4           # nhead (cancels numerically: softmax over 1 key == 1)
FFN_DIM = 64            # hidden_dim == dim_feedforward
NUM_LAYERS = 2          # num_layers
NUM_CLASSES = 1         # num_classes
BN_EPS = 1e-5
LN_EPS = 1e-5

OUT_PAD = 128           # lane-dense padded classifier output width
MATMUL_DTYPE = jnp.bfloat16   # MXU operand dtype (f32 accumulation)


def _layernorm(x, gamma, beta, eps=LN_EPS):
    mu = jnp.mean(x, axis=-1, keepdims=True)
    xc = x - mu
    var = jnp.mean(xc * xc, axis=-1, keepdims=True)   # biased var, like torch LayerNorm
    return xc * jax.lax.rsqrt(var + eps) * gamma + beta


def text_transformer_kernel(
    x_ref,                               # (TILE_B, INPUT_DIM) f32
    wf_ref, bf_ref,                      # BN-folded feature Linear: (32,128) bf16, (1,128) f32
    wa_ref, ba_ref,                      # folded attention (wv@wo): (L,128,128) bf16, (L,1,128) f32
    n1g_ref, n1b_ref,                    # norm1: (L,1,128) f32
    w1_ref, b1_ref,                      # FFN linear1: (L,128,64) bf16, (L,1,64) f32
    w2_ref, b2_ref,                      # FFN linear2: (L,64,128) bf16, (L,1,128) f32
    n2g_ref, n2b_ref,                    # norm2 (last layer folded to 1/0): (L,1,128) f32
    wc_ref, bc_ref,                      # padded classifier: (128,128) bf16, (1,128) f32
    out_ref,                             # (TILE_B, OUT_PAD) f32
):
    mm = MATMUL_DTYPE
    x = x_ref[...]

    # feature_extractor: Linear (BatchNorm folded in) -> ReLU -> Dropout(identity)
    h = jnp.dot(x.astype(mm), wf_ref[...], preferred_element_type=jnp.float32) + bf_ref[...]
    h = jnp.maximum(h, 0.0)

    # x.unsqueeze(1) -> sequence length 1.  With a single key per query the softmax
    # over keys is exactly 1 for every head, so multi-head self-attention reduces
    # EXACTLY to out_proj(V_proj(h)); wv@wo is pre-folded into wa in the wrapper.
    for l in range(NUM_LAYERS):
        # --- self-attention block (post-norm, as in nn.TransformerEncoderLayer) ---
        attn = jnp.dot(h.astype(mm), wa_ref[l], preferred_element_type=jnp.float32) + ba_ref[l]
        h = _layernorm(h + attn, n1g_ref[l], n1b_ref[l])
        # --- feed-forward block (ReLU activation, dropout == identity) ---
        ff = jnp.dot(h.astype(mm), w1_ref[l], preferred_element_type=jnp.float32) + b1_ref[l]
        ff = jnp.maximum(ff, 0.0)
        ff = jnp.dot(ff.astype(mm), w2_ref[l], preferred_element_type=jnp.float32) + b2_ref[l]
        h = _layernorm(h + ff, n2g_ref[l], n2b_ref[l])

    # x[:, -1, :] is the (only) position; classifier head (final LN affine folded in,
    # output padded to 128 lanes so stores are unmasked / lane-dense).
    out_ref[...] = jnp.dot(h.astype(mm), wc_ref[...], preferred_element_type=jnp.float32) + bc_ref[...]


def _fold_params(p):
    """Exact algebraic folds done once in the wrapper (host/XLA side)."""
    # 1) BatchNorm1d (running stats, affine) folded into feature Linear.
    scale = p["bn_g"] * jax.lax.rsqrt(p["bn_v"] + BN_EPS)            # (1,128)
    wf = p["wf"] * scale                                             # scale columns
    bf = (p["bf"] - p["bn_m"]) * scale + p["bn_b"]

    # 2) Attention V-proj + out-proj folded into one matrix per layer.
    wa = jnp.einsum("lij,ljk->lik", p["wv"], p["wo"])                # (L,128,128)
    ba = jnp.einsum("lij,ljk->lik", p["bv"], p["wo"]) + p["bo"]      # (L,1,128)

    # 3) Final layer's norm2 affine folded into the classifier.
    g_last = p["n2g"][-1, 0]                                         # (128,)
    b_last = p["n2b"][-1, 0]                                         # (128,)
    wc = p["wc"] * g_last[:, None]                                   # (128, C)
    bc = p["bc"] + b_last[None, :] @ p["wc"]                         # (1, C)
    n2g = p["n2g"].at[-1].set(1.0)
    n2b = p["n2b"].at[-1].set(0.0)

    # 4) Lane-dense classifier output: zero-pad to OUT_PAD columns.
    wc_pad = jnp.zeros((D_MODEL, OUT_PAD), jnp.float32).at[:, :NUM_CLASSES].set(wc)
    bc_pad = jnp.zeros((1, OUT_PAD), jnp.float32).at[:, :NUM_CLASSES].set(bc)

    mm = MATMUL_DTYPE
    return dict(
        wf=wf.astype(mm), bf=bf,
        wa=wa.astype(mm), ba=ba,
        n1g=p["n1g"], n1b=p["n1b"],
        w1=p["w1"].astype(mm), b1=p["b1"],
        w2=p["w2"].astype(mm), b2=p["b2"],
        n2g=n2g, n2b=n2b,
        wc=wc_pad.astype(mm), bc=bc_pad,
    )


def _choose_tile_b(B):
    # TILE_B ~256 fills the 256-wide MXU on v6e/v7x and stays far under scoped
    # VMEM (weights ~170 KiB, (256,128) f32 temporaries ~128 KiB each).
    if B >= 256:
        return 256
    return max(8, ((B + 7) // 8) * 8)     # sublane-aligned for small batches


def text_transformer_forward(x, p):
    B = x.shape[0]
    fp = _fold_params(p)

    tile_b = _choose_tile_b(B)
    n_tiles = pl.cdiv(B, tile_b)
    b_pad = n_tiles * tile_b
    if b_pad != B:
        x = jnp.pad(x, ((0, b_pad - B), (0, 0)))

    weights = (
        fp["wf"], fp["bf"], fp["wa"], fp["ba"],
        fp["n1g"], fp["n1b"], fp["w1"], fp["b1"], fp["w2"], fp["b2"],
        fp["n2g"], fp["n2b"], fp["wc"], fp["bc"],
    )

    def resident(w):
        nd = w.ndim
        # whole array as one block, constant index_map -> DMA'd once, stays in VMEM
        return pl.BlockSpec(w.shape, lambda i, _nd=nd: (0,) * _nd)

    in_specs = [pl.BlockSpec((tile_b, INPUT_DIM), lambda i: (i, 0))]
    in_specs += [resident(w) for w in weights]
    out_specs = pl.BlockSpec((tile_b, OUT_PAD), lambda i: (i, 0))

    macs_per_row = (
        INPUT_DIM * D_MODEL
        + NUM_LAYERS * (D_MODEL * D_MODEL + 2 * D_MODEL * FFN_DIM)
        + D_MODEL * OUT_PAD
    )
    weight_bytes = sum(int(w.size) * w.dtype.itemsize for w in weights)
    cost = pl.CostEstimate(
        flops=2 * macs_per_row * b_pad,
        transcendentals=2 * NUM_LAYERS * b_pad,   # rsqrt per LayerNorm per row
        bytes_accessed=int(b_pad * INPUT_DIM * 4 + b_pad * OUT_PAD * 4 + weight_bytes),
    )

    out = pl.pallas_call(
        text_transformer_kernel,
        out_shape=jax.ShapeDtypeStruct((b_pad, OUT_PAD), jnp.float32),
        grid=(n_tiles,),
        in_specs=in_specs,
        out_specs=out_specs,
        compiler_params=pltpu.CompilerParams(
            dimension_semantics=("parallel",),     # megacore sharding on v7x
        ),
        cost_estimate=cost,
    )(x, *weights)

    return out[:B, :NUM_CLASSES]


def init_params(key):
    ks = jax.random.split(key, 16)

    def nrm(k, shape, scale=0.05):
        return (scale * jax.random.normal(k, shape)).astype(jnp.float32)

    L = NUM_LAYERS
    p = {
        # feature_extractor
        "wf": nrm(ks[0], (INPUT_DIM, D_MODEL)),
        "bf": nrm(ks[1], (1, D_MODEL)),
        "bn_g": 1.0 + nrm(ks[2], (1, D_MODEL)),
        "bn_b": nrm(ks[3], (1, D_MODEL)),
        "bn_m": nrm(ks[4], (1, D_MODEL)),
        "bn_v": 1.0 + jnp.abs(nrm(ks[5], (1, D_MODEL))),
        # transformer layers (stacked on a leading layer axis)
        "wv": nrm(ks[6], (L, D_MODEL, D_MODEL)),
        "bv": nrm(ks[7], (L, 1, D_MODEL)),
        "wo": nrm(ks[8], (L, D_MODEL, D_MODEL)),
        "bo": nrm(ks[9], (L, 1, D_MODEL)),
        "n1g": jnp.ones((L, 1, D_MODEL), jnp.float32),
        "n1b": jnp.zeros((L, 1, D_MODEL), jnp.float32),
        "w1": nrm(ks[10], (L, D_MODEL, FFN_DIM)),
        "b1": nrm(ks[11], (L, 1, FFN_DIM)),
        "w2": nrm(ks[12], (L, FFN_DIM, D_MODEL)),
        "b2": nrm(ks[13], (L, 1, D_MODEL)),
        "n2g": jnp.ones((L, 1, D_MODEL), jnp.float32),
        "n2b": jnp.zeros((L, 1, D_MODEL), jnp.float32),
        # classifier
        "wc": nrm(ks[14], (D_MODEL, NUM_CLASSES)),
        "bc": nrm(ks[15], (1, NUM_CLASSES)),
    }
    return p


def reference_forward(x, p):
    """Pure-JAX f32 reference with identical (inference) semantics, no folds."""
    h = x @ p["wf"] + p["bf"]
    h = (h - p["bn_m"]) * jax.lax.rsqrt(p["bn_v"] + BN_EPS) * p["bn_g"] + p["bn_b"]
    h = jnp.maximum(h, 0.0)
    for l in range(NUM_LAYERS):
        v = h @ p["wv"][l] + p["bv"][l]
        attn = v @ p["wo"][l] + p["bo"][l]
        h = _layernorm(h + attn, p["n1g"][l], p["n1b"][l])
        ff = jnp.maximum(h @ p["w1"][l] + p["b1"][l], 0.0)
        ff = ff @ p["w2"][l] + p["b2"][l]
        h = _layernorm(h + ff, p["n2g"][l], p["n2b"][l])
    return h @ p["wc"] + p["bc"]


if __name__ == "__main__":
    key = jax.random.PRNGKey(0)
    pkey, xkey = jax.random.split(key)
    params = init_params(pkey)

    B = 8
    x = jax.random.normal(xkey, (B, INPUT_DIM), dtype=jnp.float32)

    out = text_transformer_forward(x, params)
    out = jax.block_until_ready(out)

    ref = reference_forward(x, params)
    assert out.shape == (B, NUM_CLASSES), out.shape
    # bf16 MXU operands (f32 accumulation) -> ~0.3-1% relative deviation vs. the
    # pure-f32 reference; 2e-2 tolerance covers it comfortably.
    assert jnp.allclose(out, ref, rtol=2e-2, atol=2e-2), (out, ref)

    print("KERNEL_OK")
</pallas_src>

<mosaic_0001>
module attributes {stable_mosaic.version = 11 : i64} {
  func.func @text_transformer_kernel(%arg0: i32, %arg1: memref<8x32xf32, #tpu.memory_space<vmem>>, %arg2: memref<32x128xbf16, #tpu.memory_space<vmem>>, %arg3: memref<1x128xf32, #tpu.memory_space<vmem>>, %arg4: memref<2x128x128xbf16, #tpu.memory_space<vmem>>, %arg5: memref<2x1x128xf32, #tpu.memory_space<vmem>>, %arg6: memref<2x1x128xf32, #tpu.memory_space<vmem>>, %arg7: memref<2x1x128xf32, #tpu.memory_space<vmem>>, %arg8: memref<2x128x64xbf16, #tpu.memory_space<vmem>>, %arg9: memref<2x1x64xf32, #tpu.memory_space<vmem>>, %arg10: memref<2x64x128xbf16, #tpu.memory_space<vmem>>, %arg11: memref<2x1x128xf32, #tpu.memory_space<vmem>>, %arg12: memref<2x1x128xf32, #tpu.memory_space<vmem>>, %arg13: memref<2x1x128xf32, #tpu.memory_space<vmem>>, %arg14: memref<128x128xbf16, #tpu.memory_space<vmem>>, %arg15: memref<1x128xf32, #tpu.memory_space<vmem>>, %arg16: memref<8x128xf32, #tpu.memory_space<vmem>>) attributes {dimension_semantics = [#tpu.dimension_semantics<parallel>], iteration_bounds = array<i64: 1>, scalar_prefetch = 0 : i64, scratch_operands = 0 : i64, tpu.core_type = #tpu.core_type<tc>, window_params = [{transform_indices = @transform_0, window_bounds = array<i64: 8, 32>}, {pipeline_mode = #tpu.pipeline_mode<synchronous>, transform_indices = @transform_1, window_bounds = array<i64: 32, 128>}, {pipeline_mode = #tpu.pipeline_mode<synchronous>, transform_indices = @transform_2, window_bounds = array<i64: 1, 128>}, {pipeline_mode = #tpu.pipeline_mode<synchronous>, transform_indices = @transform_3, window_bounds = array<i64: 2, 128, 128>}, {pipeline_mode = #tpu.pipeline_mode<synchronous>, transform_indices = @transform_4, window_bounds = array<i64: 2, 1, 128>}, {pipeline_mode = #tpu.pipeline_mode<synchronous>, transform_indices = @transform_5, window_bounds = array<i64: 2, 1, 128>}, {pipeline_mode = #tpu.pipeline_mode<synchronous>, transform_indices = @transform_6, window_bounds = array<i64: 2, 1, 128>}, {pipeline_mode = #tpu.pipeline_mode<synchronous>, transform_indices = @transform_7, window_bounds = array<i64: 2, 128, 64>}, {pipeline_mode = #tpu.pipeline_mode<synchronous>, transform_indices = @transform_8, window_bounds = array<i64: 2, 1, 64>}, {pipeline_mode = #tpu.pipeline_mode<synchronous>, transform_indices = @transform_9, window_bounds = array<i64: 2, 64, 128>}, {pipeline_mode = #tpu.pipeline_mode<synchronous>, transform_indices = @transform_10, window_bounds = array<i64: 2, 1, 128>}, {pipeline_mode = #tpu.pipeline_mode<synchronous>, transform_indices = @transform_11, window_bounds = array<i64: 2, 1, 128>}, {pipeline_mode = #tpu.pipeline_mode<synchronous>, transform_indices = @transform_12, window_bounds = array<i64: 2, 1, 128>}, {pipeline_mode = #tpu.pipeline_mode<synchronous>, transform_indices = @transform_13, window_bounds = array<i64: 128, 128>}, {pipeline_mode = #tpu.pipeline_mode<synchronous>, transform_indices = @transform_14, window_bounds = array<i64: 1, 128>}, {transform_indices = @transform_15, window_bounds = array<i64: 8, 128>}]} {
    %c0 = arith.constant 0 : index
    %c0_0 = arith.constant 0 : index
    %0 = vector.load %arg1[%c0, %c0_0] : memref<8x32xf32, #tpu.memory_space<vmem>>, vector<8x32xf32>
    %1 = arith.truncf %0 : vector<8x32xf32> to vector<8x32xbf16>
    %c0_1 = arith.constant 0 : index
    %c0_2 = arith.constant 0 : index
    %2 = vector.load %arg2[%c0_1, %c0_2] : memref<32x128xbf16, #tpu.memory_space<vmem>>, vector<32x128xbf16>
    %cst = arith.constant dense<0.000000e+00> : vector<8x128xf32>
    %3 = tpu.matmul %1, %2, %cst {dimension_numbers = #tpu.dot_dimension_numbers<[1], [0], [0], [1], [0, 0, 1, 1], [], []>} : vector<8x32xbf16>, vector<32x128xbf16>, vector<8x128xf32> -> vector<8x128xf32>
    %c0_3 = arith.constant 0 : index
    %c0_4 = arith.constant 0 : index
    %4 = vector.load %arg3[%c0_3, %c0_4] : memref<1x128xf32, #tpu.memory_space<vmem>>, vector<1x128xf32>
    %5 = vector.broadcast %4 : vector<1x128xf32> to vector<8x128xf32>
    %6 = arith.addf %3, %5 : vector<8x128xf32>
    %cst_5 = arith.constant 0.000000e+00 : f32
    %7 = vector.broadcast %cst_5 : f32 to vector<8x128xf32>
    %8 = arith.maximumf %6, %7 : vector<8x128xf32>
    %9 = arith.truncf %8 : vector<8x128xf32> to vector<8x128xbf16>
    %c0_6 = arith.constant 0 : index
    %c0_7 = arith.constant 0 : index
    %c0_8 = arith.constant 0 : index
    %10 = vector.load %arg4[%c0_6, %c0_7, %c0_8] : memref<2x128x128xbf16, #tpu.memory_space<vmem>>, vector<1x128x128xbf16>
    %11 = vector.shape_cast %10 : vector<1x128x128xbf16> to vector<128x128xbf16>
    %cst_9 = arith.constant dense<0.000000e+00> : vector<8x128xf32>
    %12 = tpu.matmul %9, %11, %cst_9 {dimension_numbers = #tpu.dot_dimension_numbers<[1], [0], [0], [1], [0, 0, 1, 1], [], []>} : vector<8x128xbf16>, vector<128x128xbf16>, vector<8x128xf32> -> vector<8x128xf32>
    %c0_10 = arith.constant 0 : index
    %c0_11 = arith.constant 0 : index
    %c0_12 = arith.constant 0 : index
    %13 = vector.load %arg5[%c0_10, %c0_11, %c0_12] : memref<2x1x128xf32, #tpu.memory_space<vmem>>, vector<1x1x128xf32>
    %14 = vector.shape_cast %13 : vector<1x1x128xf32> to vector<1x128xf32>
    %15 = vector.broadcast %14 : vector<1x128xf32> to vector<8x128xf32>
    %16 = arith.addf %12, %15 : vector<8x128xf32>
    %17 = arith.addf %8, %16 : vector<8x128xf32>
    %c0_13 = arith.constant 0 : index
    %c0_14 = arith.constant 0 : index
    %c0_15 = arith.constant 0 : index
    %18 = vector.load %arg6[%c0_13, %c0_14, %c0_15] : memref<2x1x128xf32, #tpu.memory_space<vmem>>, vector<1x1x128xf32>
    %19 = vector.shape_cast %18 : vector<1x1x128xf32> to vector<1x128xf32>
    %c0_16 = arith.constant 0 : index
    %c0_17 = arith.constant 0 : index
    %c0_18 = arith.constant 0 : index
    %20 = vector.load %arg7[%c0_16, %c0_17, %c0_18] : memref<2x1x128xf32, #tpu.memory_space<vmem>>, vector<1x1x128xf32>
    %21 = vector.shape_cast %20 : vector<1x1x128xf32> to vector<1x128xf32>
    %cst_19 = arith.constant dense<0.000000e+00> : vector<8xf32>
    %22 = vector.multi_reduction <add>, %17, %cst_19 [1] : vector<8x128xf32> to vector<8xf32>
    %23 = vector.shape_cast %22 : vector<8xf32> to vector<8x1xf32>
    %cst_20 = arith.constant 1.280000e+02 : f32
    %24 = vector.broadcast %cst_20 : f32 to vector<8x1xf32>
    %25 = arith.divf %23, %24 : vector<8x1xf32>
    %26 = vector.broadcast %25 : vector<8x1xf32> to vector<8x128xf32>
    %27 = arith.subf %17, %26 : vector<8x128xf32>
    %28 = arith.mulf %27, %27 : vector<8x128xf32>
    %cst_21 = arith.constant dense<0.000000e+00> : vector<8xf32>
    %29 = vector.multi_reduction <add>, %28, %cst_21 [1] : vector<8x128xf32> to vector<8xf32>
    %30 = vector.shape_cast %29 : vector<8xf32> to vector<8x1xf32>
    %cst_22 = arith.constant 1.280000e+02 : f32
    %31 = vector.broadcast %cst_22 : f32 to vector<8x1xf32>
    %32 = arith.divf %30, %31 : vector<8x1xf32>
    %cst_23 = arith.constant 9.99999974E-6 : f32
    %33 = vector.broadcast %cst_23 : f32 to vector<8x1xf32>
    %34 = arith.addf %32, %33 : vector<8x1xf32>
    %35 = math.rsqrt %34 : vector<8x1xf32>
    %36 = vector.broadcast %35 : vector<8x1xf32> to vector<8x128xf32>
    %37 = arith.mulf %27, %36 : vector<8x128xf32>
    %38 = vector.broadcast %19 : vector<1x128xf32> to vector<8x128xf32>
    %39 = arith.mulf %37, %38 : vector<8x128xf32>
    %40 = vector.broadcast %21 : vector<1x128xf32> to vector<8x128xf32>
    %41 = arith.addf %39, %40 : vector<8x128xf32>
    %42 = arith.truncf %41 : vector<8x128xf32> to vector<8x128xbf16>
    %c0_24 = arith.constant 0 : index
    %c0_25 = arith.constant 0 : index
    %c0_26 = arith.constant 0 : index
    %43 = vector.load %arg8[%c0_24, %c0_25, %c0_26] : memref<2x128x64xbf16, #tpu.memory_space<vmem>>, vector<1x128x64xbf16>
    %44 = vector.shape_cast %43 : vector<1x128x64xbf16> to vector<128x64xbf16>
    %cst_27 = arith.constant dense<0.000000e+00> : vector<8x64xf32>
    %45 = tpu.matmul %42, %44, %cst_27 {dimension_numbers = #tpu.dot_dimension_numbers<[1], [0], [0], [1], [0, 0, 1, 1], [], []>} : vector<8x128xbf16>, vector<128x64xbf16>, vector<8x64xf32> -> vector<8x64xf32>
    %c0_28 = arith.constant 0 : index
    %c0_29 = arith.constant 0 : index
    %c0_30 = arith.constant 0 : index
    %46 = vector.load %arg9[%c0_28, %c0_29, %c0_30] : memref<2x1x64xf32, #tpu.memory_space<vmem>>, vector<1x1x64xf32>
    %47 = vector.shape_cast %46 : vector<1x1x64xf32> to vector<1x64xf32>
    %48 = vector.broadcast %47 : vector<1x64xf32> to vector<8x64xf32>
    %49 = arith.addf %45, %48 : vector<8x64xf32>
    %cst_31 = arith.constant 0.000000e+00 : f32
    %50 = vector.broadcast %cst_31 : f32 to vector<8x64xf32>
    %51 = arith.maximumf %49, %50 : vector<8x64xf32>
    %52 = arith.truncf %51 : vector<8x64xf32> to vector<8x64xbf16>
    %c0_32 = arith.constant 0 : index
    %c0_33 = arith.constant 0 : index
    %c0_34 = arith.constant 0 : index
    %53 = vector.load %arg10[%c0_32, %c0_33, %c0_34] : memref<2x64x128xbf16, #tpu.memory_space<vmem>>, vector<1x64x128xbf16>
    %54 = vector.shape_cast %53 : vector<1x64x128xbf16> to vector<64x128xbf16>
    %cst_35 = arith.constant dense<0.000000e+00> : vector<8x128xf32>
    %55 = tpu.matmul %52, %54, %cst_35 {dimension_numbers = #tpu.dot_dimension_numbers<[1], [0], [0], [1], [0, 0, 1, 1], [], []>} : vector<8x64xbf16>, vector<64x128xbf16>, vector<8x128xf32> -> vector<8x128xf32>
    %c0_36 = arith.constant 0 : index
    %c0_37 = arith.constant 0 : index
    %c0_38 = arith.constant 0 : index
    %56 = vector.load %arg11[%c0_36, %c0_37, %c0_38] : memref<2x1x128xf32, #tpu.memory_space<vmem>>, vector<1x1x128xf32>
    %57 = vector.shape_cast %56 : vector<1x1x128xf32> to vector<1x128xf32>
    %58 = vector.broadcast %57 : vector<1x128xf32> to vector<8x128xf32>
    %59 = arith.addf %55, %58 : vector<8x128xf32>
    %60 = arith.addf %41, %59 : vector<8x128xf32>
    %c0_39 = arith.constant 0 : index
    %c0_40 = arith.constant 0 : index
    %c0_41 = arith.constant 0 : index
    %61 = vector.load %arg12[%c0_39, %c0_40, %c0_41] : memref<2x1x128xf32, #tpu.memory_space<vmem>>, vector<1x1x128xf32>
    %62 = vector.shape_cast %61 : vector<1x1x128xf32> to vector<1x128xf32>
    %c0_42 = arith.constant 0 : index
    %c0_43 = arith.constant 0 : index
    %c0_44 = arith.constant 0 : index
    %63 = vector.load %arg13[%c0_42, %c0_43, %c0_44] : memref<2x1x128xf32, #tpu.memory_space<vmem>>, vector<1x1x128xf32>
    %64 = vector.shape_cast %63 : vector<1x1x128xf32> to vector<1x128xf32>
    %cst_45 = arith.constant dense<0.000000e+00> : vector<8xf32>
    %65 = vector.multi_reduction <add>, %60, %cst_45 [1] : vector<8x128xf32> to vector<8xf32>
    %66 = vector.shape_cast %65 : vector<8xf32> to vector<8x1xf32>
    %cst_46 = arith.constant 1.280000e+02 : f32
    %67 = vector.broadcast %cst_46 : f32 to vector<8x1xf32>
    %68 = arith.divf %66, %67 : vector<8x1xf32>
    %69 = vector.broadcast %68 : vector<8x1xf32> to vector<8x128xf32>
    %70 = arith.subf %60, %69 : vector<8x128xf32>
    %71 = arith.mulf %70, %70 : vector<8x128xf32>
    %cst_47 = arith.constant dense<0.000000e+00> : vector<8xf32>
    %72 = vector.multi_reduction <add>, %71, %cst_47 [1] : vector<8x128xf32> to vector<8xf32>
    %73 = vector.shape_cast %72 : vector<8xf32> to vector<8x1xf32>
    %cst_48 = arith.constant 1.280000e+02 : f32
    %74 = vector.broadcast %cst_48 : f32 to vector<8x1xf32>
    %75 = arith.divf %73, %74 : vector<8x1xf32>
    %cst_49 = arith.constant 9.99999974E-6 : f32
    %76 = vector.broadcast %cst_49 : f32 to vector<8x1xf32>
    %77 = arith.addf %75, %76 : vector<8x1xf32>
    %78 = math.rsqrt %77 : vector<8x1xf32>
    %79 = vector.broadcast %78 : vector<8x1xf32> to vector<8x128xf32>
    %80 = arith.mulf %70, %79 : vector<8x128xf32>
    %81 = vector.broadcast %62 : vector<1x128xf32> to vector<8x128xf32>
    %82 = arith.mulf %80, %81 : vector<8x128xf32>
    %83 = vector.broadcast %64 : vector<1x128xf32> to vector<8x128xf32>
    %84 = arith.addf %82, %83 : vector<8x128xf32>
    %85 = arith.truncf %84 : vector<8x128xf32> to vector<8x128xbf16>
    %c1 = arith.constant 1 : index
    %c0_50 = arith.constant 0 : index
    %c0_51 = arith.constant 0 : index
    %86 = vector.load %arg4[%c1, %c0_50, %c0_51] : memref<2x128x128xbf16, #tpu.memory_space<vmem>>, vector<1x128x128xbf16>
    %87 = vector.shape_cast %86 : vector<1x128x128xbf16> to vector<128x128xbf16>
    %cst_52 = arith.constant dense<0.000000e+00> : vector<8x128xf32>
    %88 = tpu.matmul %85, %87, %cst_52 {dimension_numbers = #tpu.dot_dimension_numbers<[1], [0], [0], [1], [0, 0, 1, 1], [], []>} : vector<8x128xbf16>, vector<128x128xbf16>, vector<8x128xf32> -> vector<8x128xf32>
    %c1_53 = arith.constant 1 : index
    %c0_54 = arith.constant 0 : index
    %c0_55 = arith.constant 0 : index
    %89 = vector.load %arg5[%c1_53, %c0_54, %c0_55] : memref<2x1x128xf32, #tpu.memory_space<vmem>>, vector<1x1x128xf32>
    %90 = vector.shape_cast %89 : vector<1x1x128xf32> to vector<1x128xf32>
    %91 = vector.broadcast %90 : vector<1x128xf32> to vector<8x128xf32>
    %92 = arith.addf %88, %91 : vector<8x128xf32>
    %93 = arith.addf %84, %92 : vector<8x128xf32>
    %c1_56 = arith.constant 1 : index
    %c0_57 = arith.constant 0 : index
    %c0_58 = arith.constant 0 : index
    %94 = vector.load %arg6[%c1_56, %c0_57, %c0_58] : memref<2x1x128xf32, #tpu.memory_space<vmem>>, vector<1x1x128xf32>
    %95 = vector.shape_cast %94 : vector<1x1x128xf32> to vector<1x128xf32>
    %c1_59 = arith.constant 1 : index
    %c0_60 = arith.constant 0 : index
    %c0_61 = arith.constant 0 : index
    %96 = vector.load %arg7[%c1_59, %c0_60, %c0_61] : memref<2x1x128xf32, #tpu.memory_space<vmem>>, vector<1x1x128xf32>
    %97 = vector.shape_cast %96 : vector<1x1x128xf32> to vector<1x128xf32>
    %cst_62 = arith.constant dense<0.000000e+00> : vector<8xf32>
    %98 = vector.multi_reduction <add>, %93, %cst_62 [1] : vector<8x128xf32> to vector<8xf32>
    %99 = vector.shape_cast %98 : vector<8xf32> to vector<8x1xf32>
    %cst_63 = arith.constant 1.280000e+02 : f32
    %100 = vector.broadcast %cst_63 : f32 to vector<8x1xf32>
    %101 = arith.divf %99, %100 : vector<8x1xf32>
    %102 = vector.broadcast %101 : vector<8x1xf32> to vector<8x128xf32>
    %103 = arith.subf %93, %102 : vector<8x128xf32>
    %104 = arith.mulf %103, %103 : vector<8x128xf32>
    %cst_64 = arith.constant dense<0.000000e+00> : vector<8xf32>
    %105 = vector.multi_reduction <add>, %104, %cst_64 [1] : vector<8x128xf32> to vector<8xf32>
    %106 = vector.shape_cast %105 : vector<8xf32> to vector<8x1xf32>
    %cst_65 = arith.constant 1.280000e+02 : f32
    %107 = vector.broadcast %cst_65 : f32 to vector<8x1xf32>
    %108 = arith.divf %106, %107 : vector<8x1xf32>
    %cst_66 = arith.constant 9.99999974E-6 : f32
    %109 = vector.broadcast %cst_66 : f32 to vector<8x1xf32>
    %110 = arith.addf %108, %109 : vector<8x1xf32>
    %111 = math.rsqrt %110 : vector<8x1xf32>
    %112 = vector.broadcast %111 : vector<8x1xf32> to vector<8x128xf32>
    %113 = arith.mulf %103, %112 : vector<8x128xf32>
    %114 = vector.broadcast %95 : vector<1x128xf32> to vector<8x128xf32>
    %115 = arith.mulf %113, %114 : vector<8x128xf32>
    %116 = vector.broadcast %97 : vector<1x128xf32> to vector<8x128xf32>
    %117 = arith.addf %115, %116 : vector<8x128xf32>
    %118 = arith.truncf %117 : vector<8x128xf32> to vector<8x128xbf16>
    %c1_67 = arith.constant 1 : index
    %c0_68 = arith.constant 0 : index
    %c0_69 = arith.constant 0 : index
    %119 = vector.load %arg8[%c1_67, %c0_68, %c0_69] : memref<2x128x64xbf16, #tpu.memory_space<vmem>>, vector<1x128x64xbf16>
    %120 = vector.shape_cast %119 : vector<1x128x64xbf16> to vector<128x64xbf16>
    %cst_70 = arith.constant dense<0.000000e+00> : vector<8x64xf32>
    %121 = tpu.matmul %118, %120, %cst_70 {dimension_numbers = #tpu.dot_dimension_numbers<[1], [0], [0], [1], [0, 0, 1, 1], [], []>} : vector<8x128xbf16>, vector<128x64xbf16>, vector<8x64xf32> -> vector<8x64xf32>
    %c1_71 = arith.constant 1 : index
    %c0_72 = arith.constant 0 : index
    %c0_73 = arith.constant 0 : index
    %122 = vector.load %arg9[%c1_71, %c0_72, %c0_73] : memref<2x1x64xf32, #tpu.memory_space<vmem>>, vector<1x1x64xf32>
    %123 = vector.shape_cast %122 : vector<1x1x64xf32> to vector<1x64xf32>
    %124 = vector.broadcast %123 : vector<1x64xf32> to vector<8x64xf32>
    %125 = arith.addf %121, %124 : vector<8x64xf32>
    %cst_74 = arith.constant 0.000000e+00 : f32
    %126 = vector.broadcast %cst_74 : f32 to vector<8x64xf32>
    %127 = arith.maximumf %125, %126 : vector<8x64xf32>
    %128 = arith.truncf %127 : vector<8x64xf32> to vector<8x64xbf16>
    %c1_75 = arith.constant 1 : index
    %c0_76 = arith.constant 0 : index
    %c0_77 = arith.constant 0 : index
    %129 = vector.load %arg10[%c1_75, %c0_76, %c0_77] : memref<2x64x128xbf16, #tpu.memory_space<vmem>>, vector<1x64x128xbf16>
    %130 = vector.shape_cast %129 : vector<1x64x128xbf16> to vector<64x128xbf16>
    %cst_78 = arith.constant dense<0.000000e+00> : vector<8x128xf32>
    %131 = tpu.matmul %128, %130, %cst_78 {dimension_numbers = #tpu.dot_dimension_numbers<[1], [0], [0], [1], [0, 0, 1, 1], [], []>} : vector<8x64xbf16>, vector<64x128xbf16>, vector<8x128xf32> -> vector<8x128xf32>
    %c1_79 = arith.constant 1 : index
    %c0_80 = arith.constant 0 : index
    %c0_81 = arith.constant 0 : index
    %132 = vector.load %arg11[%c1_79, %c0_80, %c0_81] : memref<2x1x128xf32, #tpu.memory_space<vmem>>, vector<1x1x128xf32>
    %133 = vector.shape_cast %132 : vector<1x1x128xf32> to vector<1x128xf32>
    %134 = vector.broadcast %133 : vector<1x128xf32> to vector<8x128xf32>
    %135 = arith.addf %131, %134 : vector<8x128xf32>
    %136 = arith.addf %117, %135 : vector<8x128xf32>
    %c1_82 = arith.constant 1 : index
    %c0_83 = arith.constant 0 : index
    %c0_84 = arith.constant 0 : index
    %137 = vector.load %arg12[%c1_82, %c0_83, %c0_84] : memref<2x1x128xf32, #tpu.memory_space<vmem>>, vector<1x1x128xf32>
    %138 = vector.shape_cast %137 : vector<1x1x128xf32> to vector<1x128xf32>
    %c1_85 = arith.constant 1 : index
    %c0_86 = arith.constant 0 : index
    %c0_87 = arith.constant 0 : index
    %139 = vector.load %arg13[%c1_85, %c0_86, %c0_87] : memref<2x1x128xf32, #tpu.memory_space<vmem>>, vector<1x1x128xf32>
    %140 = vector.shape_cast %139 : vector<1x1x128xf32> to vector<1x128xf32>
    %cst_88 = arith.constant dense<0.000000e+00> : vector<8xf32>
    %141 = vector.multi_reduction <add>, %136, %cst_88 [1] : vector<8x128xf32> to vector<8xf32>
    %142 = vector.shape_cast %141 : vector<8xf32> to vector<8x1xf32>
    %cst_89 = arith.constant 1.280000e+02 : f32
    %143 = vector.broadcast %cst_89 : f32 to vector<8x1xf32>
    %144 = arith.divf %142, %143 : vector<8x1xf32>
    %145 = vector.broadcast %144 : vector<8x1xf32> to vector<8x128xf32>
    %146 = arith.subf %136, %145 : vector<8x128xf32>
    %147 = arith.mulf %146, %146 : vector<8x128xf32>
    %cst_90 = arith.constant dense<0.000000e+00> : vector<8xf32>
    %148 = vector.multi_reduction <add>, %147, %cst_90 [1] : vector<8x128xf32> to vector<8xf32>
    %149 = vector.shape_cast %148 : vector<8xf32> to vector<8x1xf32>
    %cst_91 = arith.constant 1.280000e+02 : f32
    %150 = vector.broadcast %cst_91 : f32 to vector<8x1xf32>
    %151 = arith.divf %149, %150 : vector<8x1xf32>
    %cst_92 = arith.constant 9.99999974E-6 : f32
    %152 = vector.broadcast %cst_92 : f32 to vector<8x1xf32>
    %153 = arith.addf %151, %152 : vector<8x1xf32>
    %154 = math.rsqrt %153 : vector<8x1xf32>
    %155 = vector.broadcast %154 : vector<8x1xf32> to vector<8x128xf32>
    %156 = arith.mulf %146, %155 : vector<8x128xf32>
    %157 = vector.broadcast %138 : vector<1x128xf32> to vector<8x128xf32>
    %158 = arith.mulf %156, %157 : vector<8x128xf32>
    %159 = vector.broadcast %140 : vector<1x128xf32> to vector<8x128xf32>
    %160 = arith.addf %158, %159 : vector<8x128xf32>
    %161 = arith.truncf %160 : vector<8x128xf32> to vector<8x128xbf16>
    %c0_93 = arith.constant 0 : index
    %c0_94 = arith.constant 0 : index
    %162 = vector.load %arg14[%c0_93, %c0_94] : memref<128x128xbf16, #tpu.memory_space<vmem>>, vector<128x128xbf16>
    %cst_95 = arith.constant dense<0.000000e+00> : vector<8x128xf32>
    %163 = tpu.matmul %161, %162, %cst_95 {dimension_numbers = #tpu.dot_dimension_numbers<[1], [0], [0], [1], [0, 0, 1, 1], [], []>} : vector<8x128xbf16>, vector<128x128xbf16>, vector<8x128xf32> -> vector<8x128xf32>
    %c0_96 = arith.constant 0 : index
    %c0_97 = arith.constant 0 : index
    %164 = vector.load %arg15[%c0_96, %c0_97] : memref<1x128xf32, #tpu.memory_space<vmem>>, vector<1x128xf32>
    %165 = vector.broadcast %164 : vector<1x128xf32> to vector<8x128xf32>
    %166 = arith.addf %163, %165 : vector<8x128xf32>
    %c0_98 = arith.constant 0 : index
    %c0_99 = arith.constant 0 : index
    %167 = vector.load %arg16[%c0_98, %c0_99] : memref<8x128xf32, #tpu.memory_space<vmem>>, vector<8x128xf32>
    tpu.vector_store %arg16[%c0_98, %c0_99], %166 {strides = array<i32>} : memref<8x128xf32, #tpu.memory_space<vmem>>, vector<8x128xf32>,
    return
  }
  func.func @transform_0(%arg0: i32) -> (i32, i32) {
    %c0_i32 = arith.constant 0 : i32
    %c0_i32_0 = arith.constant 0 : i32
    return %arg0, %c0_i32 : i32, i32
  }
  func.func @transform_1(%arg0: i32) -> (i32, i32) {
    %c0_i32 = arith.constant 0 : i32
    %c0_i32_0 = arith.constant 0 : i32
    %c0_i32_1 = arith.constant 0 : i32
    return %c0_i32, %c0_i32_0 : i32, i32
  }
  func.func @transform_2(%arg0: i32) -> (i32, i32) {
    %c0_i32 = arith.constant 0 : i32
    %c0_i32_0 = arith.constant 0 : i32
    %c0_i32_1 = arith.constant 0 : i32
    return %c0_i32, %c0_i32_0 : i32, i32
  }
  func.func @transform_3(%arg0: i32) -> (i32, i32, i32) {
    %c0_i32 = arith.constant 0 : i32
    %c0_i32_0 = arith.constant 0 : i32
    %c0_i32_1 = arith.constant 0 : i32
    %c0_i32_2 = arith.constant 0 : i32
    return %c0_i32, %c0_i32_0, %c0_i32_1 : i32, i32, i32
  }
  func.func @transform_4(%arg0: i32) -> (i32, i32, i32) {
    %c0_i32 = arith.constant 0 : i32
    %c0_i32_0 = arith.constant 0 : i32
    %c0_i32_1 = arith.constant 0 : i32
    %c0_i32_2 = arith.constant 0 : i32
    return %c0_i32, %c0_i32_0, %c0_i32_1 : i32, i32, i32
  }
  func.func @transform_5(%arg0: i32) -> (i32, i32, i32) {
    %c0_i32 = arith.constant 0 : i32
    %c0_i32_0 = arith.constant 0 : i32
    %c0_i32_1 = arith.constant 0 : i32
    %c0_i32_2 = arith.constant 0 : i32
    return %c0_i32, %c0_i32_0, %c0_i32_1 : i32, i32, i32
  }
  func.func @transform_6(%arg0: i32) -> (i32, i32, i32) {
    %c0_i32 = arith.constant 0 : i32
    %c0_i32_0 = arith.constant 0 : i32
    %c0_i32_1 = arith.constant 0 : i32
    %c0_i32_2 = arith.constant 0 : i32
    return %c0_i32, %c0_i32_0, %c0_i32_1 : i32, i32, i32
  }
  func.func @transform_7(%arg0: i32) -> (i32, i32, i32) {
    %c0_i32 = arith.constant 0 : i32
    %c0_i32_0 = arith.constant 0 : i32
    %c0_i32_1 = arith.constant 0 : i32
    %c0_i32_2 = arith.constant 0 : i32
    return %c0_i32, %c0_i32_0, %c0_i32_1 : i32, i32, i32
  }
  func.func @transform_8(%arg0: i32) -> (i32, i32, i32) {
    %c0_i32 = arith.constant 0 : i32
    %c0_i32_0 = arith.constant 0 : i32
    %c0_i32_1 = arith.constant 0 : i32
    %c0_i32_2 = arith.constant 0 : i32
    return %c0_i32, %c0_i32_0, %c0_i32_1 : i32, i32, i32
  }
  func.func @transform_9(%arg0: i32) -> (i32, i32, i32) {
    %c0_i32 = arith.constant 0 : i32
    %c0_i32_0 = arith.constant 0 : i32
    %c0_i32_1 = arith.constant 0 : i32
    %c0_i32_2 = arith.constant 0 : i32
    return %c0_i32, %c0_i32_0, %c0_i32_1 : i32, i32, i32
  }
  func.func @transform_10(%arg0: i32) -> (i32, i32, i32) {
    %c0_i32 = arith.constant 0 : i32
    %c0_i32_0 = arith.constant 0 : i32
    %c0_i32_1 = arith.constant 0 : i32
    %c0_i32_2 = arith.constant 0 : i32
    return %c0_i32, %c0_i32_0, %c0_i32_1 : i32, i32, i32
  }
  func.func @transform_11(%arg0: i32) -> (i32, i32, i32) {
    %c0_i32 = arith.constant 0 : i32
    %c0_i32_0 = arith.constant 0 : i32
    %c0_i32_1 = arith.constant 0 : i32
    %c0_i32_2 = arith.constant 0 : i32
    return %c0_i32, %c0_i32_0, %c0_i32_1 : i32, i32, i32
  }
  func.func @transform_12(%arg0: i32) -> (i32, i32, i32) {
    %c0_i32 = arith.constant 0 : i32
    %c0_i32_0 = arith.constant 0 : i32
    %c0_i32_1 = arith.constant 0 : i32
    %c0_i32_2 = arith.constant 0 : i32
    return %c0_i32, %c0_i32_0, %c0_i32_1 : i32, i32, i32
  }
  func.func @transform_13(%arg0: i32) -> (i32, i32) {
    %c0_i32 = arith.constant 0 : i32
    %c0_i32_0 = arith.constant 0 : i32
    %c0_i32_1 = arith.constant 0 : i32
    return %c0_i32, %c0_i32_0 : i32, i32
  }
  func.func @transform_14(%arg0: i32) -> (i32, i32) {
    %c0_i32 = arith.constant 0 : i32
    %c0_i32_0 = arith.constant 0 : i32
    %c0_i32_1 = arith.constant 0 : i32
    return %c0_i32, %c0_i32_0 : i32, i32
  }
  func.func @transform_15(%arg0: i32) -> (i32, i32) {
    %c0_i32 = arith.constant 0 : i32
    %c0_i32_0 = arith.constant 0 : i32
    return %arg0, %c0_i32 : i32, i32
  }
}

</mosaic_0001>

<bundles_post_ra>
// kernel: tpu_custom_call.1
= control target key start
LH: loop header
LB: loop body
LE: loop exit
PB: predicated region body
PF: predicated region fallthrough
CT: control target
= control target key end

     0   :  { %20 = vsyncpa [#allocation3], 0  ;;  %s1875_s0 = inlined_call_operand.vmem [shape: f32[8,32], index: 0, kind: input, shape index: {}]   ;;  %s1876_s1 = inlined_call_operand.hbm [shape: bf16[32,128], index: 1, kind: input, shape index: {}]   ;;  %s1877_s2 = inlined_call_operand.hbm [shape: f32[1,128], index: 2, kind: input, shape index: {}]   ;;  %s1878_s3 = inlined_call_operand.vmem [shape: bf16[2,128,128], index: 3, kind: input, shape index: {}]   ;;  %s1879_s4 = inlined_call_operand.vmem [shape: f32[2,1,128], index: 4, kind: input, shape index: {}]   ;;  %s1880_s5 = inlined_call_operand.vmem [shape: f32[2,1,128], index: 5, kind: input, shape index: {}]   ;;  %s1881_s6 = inlined_call_operand.vmem [shape: f32[2,1,128], index: 6, kind: input, shape index: {}]   ;;  %s1882_s7 = inlined_call_operand.vmem [shape: bf16[2,128,64], index: 7, kind: input, shape index: {}]   ;;  %s1883_s8 = inlined_call_operand.vmem [shape: f32[2,1,64], index: 8, kind: input, shape index: {}]   ;;  %s1884_s9 = inlined_call_operand.vmem [shape: bf16[2,64,128], index: 9, kind: input, shape index: {}]   ;;  %s1885_s10 = inlined_call_operand.vmem [shape: f32[2,1,128], index: 10, kind: input, shape index: {}]   ;;  %s1886_s11 = inlined_call_operand.vmem [shape: f32[2,1,128], index: 11, kind: input, shape index: {}]   ;;  %s1887_s12 = inlined_call_operand.vmem [shape: f32[2,1,128], index: 12, kind: input, shape index: {}]   ;;  %s1888_s13 = inlined_call_operand.hbm [shape: bf16[128,128], index: 13, kind: input, shape index: {}]   ;;  %s1889_s14 = inlined_call_operand.vmem [shape: f32[1,128], index: 14, kind: input, shape index: {}]   ;;  %s1890_s15 = inlined_call_operand.hbm [shape: f32[8,128], index: 15, kind: output, shape index: {}]  }
   0x1   :  { %21 = vsyncpa [#allocation6], 0 }
   0x2   :  { %22 = vsyncpa [#allocation4], 0  ;;  %s1496_s18 = smov [#allocation5]   ;;  %s1497_s20 = smov [#allocation2]  }
   0x3   :  { %s43_s19 = sshll.u32 %s1496_s18, 4  ;;  %s30_s21 = sshll.u32 %s1497_s20, 4  ;;  %s44_s19 = int_to_ptr.vmem [resolvable:$true] %s43_s19  ;;  %s1584_s21 = int_to_ptr.vmem [resolvable:$true] %s30_s21 }
   0x4   :  { %s1402_s24 = scalar_lea.hbm %s1877_s2, 16 }
   0x5   :  { %p1403_p0 = scmp.ne.s32.totalorder %s1877_s2, %s1402_s24  ;;  %p1406_p1 = scmp.lt.u32.totalorder %s1402_s24, %s1877_s2 }
   0x7   :  { %p1408_p2 = pnand %p1406_p1, %p1403_p0 }
   0x9   :  { %1411 = shalt.err (!%p1408_p2)
}
   0xa   :  { %s1412_s29 = scalar_lea.vmem %s44_s19, 16  ;;  %s1416_s30 = scalar_lea.vmem %s44_s19, 32 }
   0xb   :  { %p1413_p3 = scmp.ne.s32.totalorder %s44_s19, %s1412_s29  ;;  %p1417_p4 = scmp.lt.s32.totalorder %s44_s19, %s44_s19 }
   0xc   :  { %p1418_p5 = scmp.lt.s32.totalorder %s1416_s30, %s1412_s29 }
   0xe   :  { %p1419_p6 = por %p1418_p5, %p1417_p4 }
  0x10   :  { %p1420_p7 = pnand %p1419_p6, %p1413_p3 }
  0x12   :  { %1423 = shalt.err (!%p1420_p7)
}
  0x13   :  { %46 = dma.hbm_to_vmem [thread:$0]  %s1877_s2, 16, %s44_s19, [#allocation6]  }
  0x14   :  { %s1424_s22 = scalar_lea.hbm %s1876_s1, 256 }
  0x15   :  { %p1425_p8 = scmp.ne.s32.totalorder %s1876_s1, %s1424_s22  ;;  %p1428_p9 = scmp.lt.u32.totalorder %s1424_s22, %s1876_s1 }
  0x17   :  { %p1430_p10 = pnand %p1428_p9, %p1425_p8 }
  0x19   :  { %1433 = shalt.err (!%p1430_p10)
}
  0x1a   :  { %s1434_s27 = scalar_lea.vmem %s1584_s21, 256  ;;  %p1439_p12 = scmp.lt.s32.totalorder %s1584_s21, %s1584_s21 }
  0x1b   :  { %p1435_p11 = scmp.ne.s32.totalorder %s1584_s21, %s1434_s27  ;;  %p1440_p13 = scmp.lt.s32.totalorder %s1434_s27, %s1434_s27 }
  0x1d   :  { %p1441_p0 = por %p1440_p13, %p1439_p12 }
  0x1f   :  { %p1442_p1 = pnand %p1441_p0, %p1435_p11 }
  0x21   :  { %1445 = shalt.err (!%p1442_p1)
}
  0x22   :  { %s1498_s2 = smov 64   ;;  %s1499_s19 = smov 4  }
  0x23   :  { %36 = dma.hbm_to_vmem [thread:$0]  %s1876_s1, 256, %s1584_s21, [#allocation3], %s1498_s2, %s1498_s2, %s1499_s19  }
  0x24   :  { %s1500_s30 = smov [#allocation7]   ;;  %s1446_s20 = scalar_lea.hbm %s1888_s13, 1024 }
  0x25   :  { %s72_s16 = sshll.u32 %s1500_s30, 4  ;;  %p1447_p2 = scmp.ne.s32.totalorder %s1888_s13, %s1446_s20  ;;  %s73_s16 = int_to_ptr.vmem [resolvable:$true] %s72_s16 }
  0x26   :  { %p1450_p3 = scmp.lt.u32.totalorder %s1446_s20, %s1888_s13 }
  0x28   :  { %p1452_p4 = pnand %p1450_p3, %p1447_p2 }
  0x2a   :  { %1455 = shalt.err (!%p1452_p4)
}
  0x2b   :  { %s1456_s26 = scalar_lea.vmem %s73_s16, 1024  ;;  %p1461_p6 = scmp.lt.s32.totalorder %s73_s16, %s73_s16 }
  0x2c   :  { %p1457_p5 = scmp.ne.s32.totalorder %s73_s16, %s1456_s26  ;;  %p1462_p7 = scmp.lt.s32.totalorder %s1456_s26, %s1456_s26 }
  0x2e   :  { %p1463_p8 = por %p1462_p7, %p1461_p6 }
  0x30   :  { %p1464_p9 = pnand %p1463_p8, %p1457_p5 }
  0x32   :  { %1467 = shalt.err (!%p1464_p9)
}
  0x33   :  { %78 = dma.hbm_to_vmem [thread:$0]  %s1888_s13, 1024, %s73_s16, [#allocation6], %s1498_s2, %s1498_s2, %s1499_s19  }
  0x34   :  { %1490 = dma.done.wait [#allocation3], 256  }
  0x35   :  { %1491 = vsyncadd [#allocation3], 4294967040 }
  0x36   :  { %1492 = dma.done.wait [#allocation6], 1040  }
  0x37   :  { %1493 = vsyncadd [#allocation6], 4294966256  ;;  %v1501_v0 = vmov 0.0   ;;  %vm1502_vm0 = vmmov 0   ;;  %v1344_v1 = vld [vmem:[#allocation2] sm:$0xff]   ;;  %v1345_v2 = vld [vmem:[#allocation2 + $0x8] sm:$0xff]  }
  0x38   :  { %1204 = vmatprep.subr.bf16.mxu0 %v1501_v0  ;;  %1208 = vmatprep.mubr.msk.bf16.mxu0 %vm1502_vm0, %v1501_v0  ;;  %v91_v3 = vld [vmem:[%s1875_s0] sm:$0xff]  ;;  %v1347_v6 = vld [vmem:[%s1878_s3 + $0x8] sm:$0xff]   ;;  %vm116_vm1 = vcmask 261120   ;;  %v1348_v7 = vld [vmem:[%s1878_s3 + $0x10] sm:$0xff]   ;;  %vm455_vm2 = vcmask 523264   ;;  %s1503_s0 = smov [#allocation8]  }
  0x39   :  { %1212 = vmatprep.subr.bf16.mxu1 %v1501_v0  ;;  %1228 = vmatprep.mubr.msk.bf16.mxu1 %vm1502_vm0, %v1501_v0  ;;  %v1346_v4 = vld [vmem:[%s1878_s3] sm:$0xff]   ;;  %v92_v5 = vpack.c.bf16 %v91_v3, %v91_v3  ;;  %v1349_v8 = vld [vmem:[%s1878_s3 + $0x18] sm:$0xff]   ;;  %v1351_v10 = vld [vmem:[%s1878_s3 + $0x28] sm:$0xff]   ;;  %s1020_s16 = sshll.u32 %s1503_s0, 4  ;;  %s1021_s16 = int_to_ptr.vmem [resolvable:$true] %s1020_s16 }
  0x3a   :  { %1205 = vmatpush3.bf16.msra.mxu0 %v1344_v1  ;;  %1213 = vmatpush3.bf16.msra.mxu1 %v1346_v4  ;;  %v1350_v9 = vld [vmem:[%s1878_s3 + $0x20] sm:$0xff]   ;;  %v1352_v11 = vld [vmem:[%s1878_s3 + $0x30] sm:$0xff]   ;;  %v1353_v12 = vld [vmem:[%s1878_s3 + $0x38] sm:$0xff]   ;;  %p1473_p11 = scmp.lt.s32.totalorder %s1021_s16, %s1021_s16 }
  0x3b   :  { %1206 = vmatprep.subr.bf16.mxu0 %v1501_v0  ;;  %1214 = vmatprep.subr.bf16.mxu1 %v1501_v0  ;;  %v1030_v13 = vld [vmem:[#allocation5] ss:$0 sm:$0xff]  ;;  %v1034_v21 = vld [vmem:[%s1879_s4] ss:$0 sm:$0xff]  ;;  %v1355_v29 = vld [vmem:[%s1882_s7 + $0x8] sm:$0xff]  }
  0x3c   :  { %v1354_v28 = vld [vmem:[%s1882_s7] sm:$0xff]   ;;  %v1356_v34 = vld [vmem:[%s1882_s7 + $0x10] sm:$0xff]   ;;  %v1357_v35 = vld [vmem:[%s1882_s7 + $0x18] sm:$0xff]  }
  0x3d   :  { %v1358_v36 = vld [vmem:[%s1882_s7 + $0x20] sm:$0xff]   ;;  %v1359_v37 = vld [vmem:[%s1882_s7 + $0x28] sm:$0xff]   ;;  %v1360_v38 = vld [vmem:[%s1882_s7 + $0x30] sm:$0xff]  }
  0x3e   :  { %1207 = vmatpush3.bf16.msra.mxu0 %v1345_v2  ;;  %1215 = vmatpush3.bf16.msra.mxu1 %v1347_v6  ;;  %v1361_v39 = vld [vmem:[%s1882_s7 + $0x38] sm:$0xff]   ;;  %v1043_v44 = vld [vmem:[%s1880_s5] ss:$0 sm:$0xff]  ;;  %v1363_v51 = vld [vmem:[%s1884_s9 + $0x8] sm:$0xff]  }
  0x3f   :  { %1232 = vmatprep.subr.bf16.mxu0 %v1501_v0  ;;  %1216 = vmatprep.subr.bf16.mxu1 %v1501_v0  ;;  %v1044_v46 = vld [vmem:[%s1881_s6] ss:$0 sm:$0xff]  ;;  %v1364_v52 = vld [vmem:[%s1884_s9 + $0x10] sm:$0xff]   ;;  %v1365_v53 = vld [vmem:[%s1884_s9 + $0x18] sm:$0xff]  }
  0x40   :  { %v1362_v49 = vld [vmem:[%s1884_s9] sm:$0xff]  }
  0x41   :  { %1209 = vmatmul.mubr.msk.bf16.vlgmr.msra.gmra.mrb[0].mxu0 %vm116_vm1, %v92_v5  ;;  %v1045_v54 = vld [vmem:[%s1883_s8] ss:$0 sm:$0xff] }
  0x42   :  { %1248 = vmatprep.mubr.msk.bf16.mxu0 %vm1502_vm0, %v1501_v0  ;;  %1217 = vmatpush3.bf16.msra.mxu1 %v1348_v7  ;;  %v1054_v62 = vld [vmem:[%s1885_s10] ss:$0 sm:$0xff]  ;;  %v1367_v7 = vld [vmem:[%s1878_s3 + $0x48] sm:$0xff]  }
  0x43   :  { %1218 = vmatprep.subr.bf16.mxu1 %v1501_v0  ;;  %1233 = vmatpush3.bf16.msra.mxu0 %v1354_v28  ;;  %v1366_v6 = vld [vmem:[%s1878_s3 + $0x40] sm:$0xff]  }
  0x44   :  { %1234 = vmatprep.subr.bf16.mxu0 %v1501_v0  ;;  %v1079_v28 = vld [vmem:[%s1879_s4 + $0x1] ss:$0 sm:$0xff] }
  0x46   :  { %1219 = vmatpush3.bf16.msra.mxu1 %v1349_v8 }
  0x47   :  { %1220 = vmatprep.subr.bf16.mxu1 %v1501_v0  ;;  %1235 = vmatpush3.bf16.msra.mxu0 %v1355_v29 }
  0x48   :  { %1236 = vmatprep.subr.bf16.mxu0 %v1501_v0 }
  0x4a   :  { %1221 = vmatpush3.bf16.msra.mxu1 %v1350_v9 }
  0x4b   :  { %1222 = vmatprep.subr.bf16.mxu1 %v1501_v0  ;;  %1237 = vmatpush3.bf16.msra.mxu0 %v1356_v34 }
  0x4c   :  { %1238 = vmatprep.subr.bf16.mxu0 %v1501_v0 }
  0x4e   :  { %1223 = vmatpush3.bf16.msra.mxu1 %v1351_v10 }
  0x4f   :  { %1224 = vmatprep.subr.bf16.mxu1 %v1501_v0  ;;  %1239 = vmatpush3.bf16.msra.mxu0 %v1357_v35  ;;  %v1374_v35 = vld [vmem:[%s1882_s7 + $0x40] sm:$0xff]  }
  0x50   :  { %1240 = vmatprep.subr.bf16.mxu0 %v1501_v0 }
  0x52   :  { %1225 = vmatpush3.bf16.msra.mxu1 %v1352_v11 }
  0x53   :  { %1226 = vmatprep.subr.bf16.mxu1 %v1501_v0  ;;  %1241 = vmatpush3.bf16.msra.mxu0 %v1358_v36  ;;  %v1375_v36 = vld [vmem:[%s1882_s7 + $0x48] sm:$0xff]  }
  0x54   :  { %1242 = vmatprep.subr.bf16.mxu0 %v1501_v0 }
  0x56   :  { %1227 = vmatpush3.bf16.msra.mxu1 %v1353_v12  ;;  %v1368_v12 = vld [vmem:[%s1878_s3 + $0x50] sm:$0xff]  }
  0x57   :  { %1284 = vmatprep.subr.bf16.mxu1 %v1501_v0  ;;  %1243 = vmatpush3.bf16.msra.mxu0 %v1359_v37 }
  0x58   :  { %1244 = vmatprep.subr.bf16.mxu0 %v1501_v0 }
  0x5b   :  { %1245 = vmatpush3.bf16.msra.mxu0 %v1360_v38 }
  0x5c   :  { %1246 = vmatprep.subr.bf16.mxu0 %v1501_v0 }
  0x5f   :  { %1247 = vmatpush3.bf16.msra.mxu0 %v1361_v39 }
  0x60   :  { %1252 = vmatprep.subr.bf16.mxu0 %v1501_v0 }
 0x114   :  { %v154_v14 = vpop.f32.mrb[0].mxu0 }
 0x115   :  { %v155_v15 = vadd.f32 %v1030_v13, %v154_v14  ;;  %v1210_v16 = vpop.f32.mrb[1].mxu0  ;;  %v1369_v13 = vld [vmem:[%s1878_s3 + $0x58] sm:$0xff]   ;;  %v1370_v14 = vld [vmem:[%s1878_s3 + $0x60] sm:$0xff]  }
 0x116   :  { %v157_v17 = vpop.f32.mrb[2].mxu0  ;;  %v1372_v16 = vld [vmem:[%s1878_s3 + $0x70] sm:$0xff]  }
 0x117   :  { %v160_v18 = vmax.f32 %v155_v15, 0.0  ;;  %v1211_v19 = vpop.f32.mrb[3].mxu0  ;;  %v1371_v15 = vld [vmem:[%s1878_s3 + $0x68] sm:$0xff]   ;;  %v1373_v17 = vld [vmem:[%s1878_s3 + $0x78] sm:$0xff]  }
 0x119   :  { %v161_v20 = vpack.c.bf16 %v160_v18, %v160_v18 }
 0x11b   :  { %1229 = vmatmul.mubr.bf16.vlgmr.msra.gmra.mrb[0].mxu1 %v161_v20 }
 0x11c   :  { %1300 = vmatprep.mubr.msk.bf16.mxu1 %vm1502_vm0, %v1501_v0  ;;  %1285 = vmatpush3.bf16.msra.mxu1 %v1374_v35 }
 0x11d   :  { %1286 = vmatprep.subr.bf16.mxu1 %v1501_v0 }
 0x120   :  { %1287 = vmatpush3.bf16.msra.mxu1 %v1375_v36 }
 0x121   :  { %1288 = vmatprep.subr.bf16.mxu1 %v1501_v0 }
 0x1ee   :  { %v267_v22 = vpop.f32.mrb[0].mxu1 }
 0x1ef   :  { %v268_v23 = vadd.f32 %v1034_v21, %v267_v22  ;;  %v1230_v24 = vpop.f32.mrb[1].mxu1  ;;  %v1060_v22 = vld [vmem:[%s1886_s11] ss:$0 sm:$0xff] }
 0x1f0   :  { %v270_v25 = vpop.f32.mrb[2].mxu1  ;;  %v1061_v24 = vld [vmem:[%s1887_s12] ss:$0 sm:$0xff] }
 0x1f1   :  { %v1231_v26 = vpop.f32.mrb[3].mxu1  ;;  %v273_v27 = vadd.f32 %v268_v23, %v160_v18 }
 0x1f3   :  { %276 = vadd.xlane.f32.xlu0 %v273_v27 }
 0x280   :  { %v277_v30 = vpop.xlane.xlu0 %276 }
 0x281   :  { %v279_v31 = vmul.f32 0.0078125, %v277_v30 }
 0x283   :  { %v280_v32 = vsub.f32 %v273_v27, %v279_v31 }
 0x285   :  { %v281_v33 = vmul.f32 %v280_v32, %v280_v32 }
 0x287   :  { %282 = vadd.xlane.f32.xlu0 %v281_v33 }
 0x314   :  { %v283_v40 = vpop.xlane.xlu0 %282 }
 0x315   :  { %v284_v41 = vmul.f32 0.0078125, %v283_v40 }
 0x317   :  { %v285_v42 = vadd.f32 1e-05, %v284_v41  ;;  %v1376_v41 = vld [vmem:[%s1882_s7 + $0x50] sm:$0xff]  }
 0x318   :  { %1289 = vmatpush3.bf16.msra.mxu1 %v1376_v41 }
 0x319   :  { %1394 = vrsqrt.f32 %v285_v42  ;;  %1290 = vmatprep.subr.bf16.mxu1 %v1501_v0  ;;  %v1377_v42 = vld [vmem:[%s1882_s7 + $0x58] sm:$0xff]  }
 0x31c   :  { %1291 = vmatpush3.bf16.msra.mxu1 %v1377_v42 }
 0x31d   :  { %1292 = vmatprep.subr.bf16.mxu1 %v1501_v0 }
 0x323   :  { %v1395_v43 = vpop.eup %1394 }
 0x324   :  { %v287_v45 = vmul.f32 %v1395_v43, %v280_v32  ;;  %v1378_v43 = vld [vmem:[%s1882_s7 + $0x60] sm:$0xff]  }
 0x325   :  { %1293 = vmatpush3.bf16.msra.mxu1 %v1378_v43 }
 0x326   :  { %v294_v47 = vmul.f32 %v1043_v44, %v287_v45  ;;  %1294 = vmatprep.subr.bf16.mxu1 %v1501_v0  ;;  %v1379_v44 = vld [vmem:[%s1882_s7 + $0x68] sm:$0xff]   ;;  %v1380_v45 = vld [vmem:[%s1882_s7 + $0x70] sm:$0xff]  }
 0x328   :  { %v301_v48 = vadd.f32 %v1044_v46, %v294_v47  ;;  %v1381_v46 = vld [vmem:[%s1882_s7 + $0x78] sm:$0xff]   ;;  %v1382_v47 = vld [vmem:[%s1884_s9 + $0x20] sm:$0xff]  }
 0x329   :  { %1295 = vmatpush3.bf16.msra.mxu1 %v1379_v44 }
 0x32a   :  { %v302_v50 = vpack.c.bf16 %v301_v48, %v301_v48  ;;  %1296 = vmatprep.subr.bf16.mxu1 %v1501_v0 }
 0x32c   :  { %1249 = vmatmul.mubr.bf16.vlgmr.msra.gmra.mrb[4].mxu0 %v302_v50 }
 0x32d   :  { %1253 = vmatpush3.bf16.msra.mxu0 %v1362_v49  ;;  %1260 = vmatprep.mubr.msk.bf16.mxu0 %vm1502_vm0, %v1501_v0 }
 0x32e   :  { %1254 = vmatprep.subr.bf16.mxu0 %v1501_v0  ;;  %1297 = vmatpush3.bf16.msra.mxu1 %v1380_v45 }
 0x32f   :  { %1298 = vmatprep.subr.bf16.mxu1 %v1501_v0 }
 0x331   :  { %1255 = vmatpush3.bf16.msra.mxu0 %v1363_v51 }
 0x332   :  { %1256 = vmatprep.subr.bf16.mxu0 %v1501_v0  ;;  %1299 = vmatpush3.bf16.msra.mxu1 %v1381_v46 }
 0x333   :  { %1316 = vmatprep.subr.bf16.mxu1 %v1501_v0 }
 0x335   :  { %1257 = vmatpush3.bf16.msra.mxu0 %v1364_v52 }
 0x336   :  { %1258 = vmatprep.subr.bf16.mxu0 %v1501_v0 }
 0x339   :  { %1259 = vmatpush3.bf16.msra.mxu0 %v1365_v53  ;;  %v1090_v53 = vld [vmem:[%s1880_s5 + $0x1] ss:$0 sm:$0xff] }
 0x33a   :  { %1264 = vmatprep.subr.bf16.mxu0 %v1501_v0 }
 0x3ff   :  { %v408_v55 = vpop.f32.mrb[4].mxu0 }
 0x400   :  { %v409_v56 = vadd.f32 %v1045_v54, %v408_v55  ;;  %v1250_v57 = vpop.f32.mrb[5].mxu0  ;;  %v1091_v55 = vld [vmem:[%s1881_s6 + $0x1] ss:$0 sm:$0xff] }
 0x401   :  { %v411_v58 = vpop.f32.mrb[6].mxu0 }
 0x402   :  { %v414_v59 = vmax.f32 %v409_v56, 0.0  ;;  %v1251_v60 = vpop.f32.mrb[7].mxu0 }
 0x403   :  { %v1385_v60 = vld [vmem:[%s1884_s9 + $0x38] sm:$0xff]  }
 0x404   :  { %v415_v61 = vpack.c.bf16 %v414_v59, %v414_v59  ;;  %v1384_v59 = vld [vmem:[%s1884_s9 + $0x30] sm:$0xff]  }
 0x406   :  { %1261 = vmatmul.mubr.msk.bf16.vlgmr.msra.gmra.mrb[8].mxu0 %vm455_vm2, %v415_v61  ;;  %v1109_v61 = vld [vmem:[%s1883_s8 + $0x1] ss:$0 sm:$0xff] }
 0x407   :  { %1280 = vmatprep.mubr.msk.bf16.mxu0 %vm1502_vm0, %v1501_v0  ;;  %1265 = vmatpush3.bf16.msra.mxu0 %v1366_v6  ;;  %v1127_v6 = vld [vmem:[%s1885_s10 + $0x1] ss:$0 sm:$0xff] }
 0x408   :  { %1266 = vmatprep.subr.bf16.mxu0 %v1501_v0 }
 0x40b   :  { %1267 = vmatpush3.bf16.msra.mxu0 %v1367_v7 }
 0x40c   :  { %1268 = vmatprep.subr.bf16.mxu0 %v1501_v0 }
 0x40f   :  { %1269 = vmatpush3.bf16.msra.mxu0 %v1368_v12 }
 0x410   :  { %1270 = vmatprep.subr.bf16.mxu0 %v1501_v0 }
 0x413   :  { %1271 = vmatpush3.bf16.msra.mxu0 %v1369_v13  ;;  %v1386_v13 = vld [vmem:[#allocation7] sm:$0xff]  }
 0x414   :  { %1272 = vmatprep.subr.bf16.mxu0 %v1501_v0 }
 0x417   :  { %1273 = vmatpush3.bf16.msra.mxu0 %v1370_v14  ;;  %v1387_v14 = vld [vmem:[#allocation7 + $0x8] sm:$0xff]  }
 0x418   :  { %1274 = vmatprep.subr.bf16.mxu0 %v1501_v0 }
 0x41b   :  { %1275 = vmatpush3.bf16.msra.mxu0 %v1371_v15 }
 0x41c   :  { %1276 = vmatprep.subr.bf16.mxu0 %v1501_v0 }
 0x41f   :  { %1277 = vmatpush3.bf16.msra.mxu0 %v1372_v16 }
 0x420   :  { %1278 = vmatprep.subr.bf16.mxu0 %v1501_v0 }
 0x423   :  { %1279 = vmatpush3.bf16.msra.mxu0 %v1373_v17 }
 0x424   :  { %1304 = vmatprep.subr.bf16.mxu0 %v1501_v0 }
 0x4d9   :  { %v493_v63 = vpop.f32.mrb[8].mxu0 }
 0x4da   :  { %v494_v1 = vadd.f32 %v1054_v62, %v493_v63  ;;  %v1262_v2 = vpop.f32.mrb[9].mxu0 }
 0x4db   :  { %v496_v3 = vpop.f32.mrb[10].mxu0 }
 0x4dc   :  { %v1263_v4 = vpop.f32.mrb[11].mxu0  ;;  %v499_v5 = vadd.f32 %v494_v1, %v301_v48  ;;  %v1383_v48 = vld [vmem:[%s1884_s9 + $0x28] sm:$0xff]  }
 0x4de   :  { %502 = vadd.xlane.f32.xlu1 %v499_v5 }
 0x56b   :  { %v503_v8 = vpop.xlane.xlu1 %502 }
 0x56c   :  { %v504_v9 = vmul.f32 0.0078125, %v503_v8 }
 0x56e   :  { %v505_v10 = vsub.f32 %v499_v5, %v504_v9 }
 0x570   :  { %v506_v11 = vmul.f32 %v505_v10, %v505_v10 }
 0x572   :  { %507 = vadd.xlane.f32.xlu1 %v506_v11 }
 0x5ff   :  { %v508_v18 = vpop.xlane.xlu1 %507 }
 0x600   :  { %v509_v19 = vmul.f32 0.0078125, %v508_v18 }
 0x602   :  { %v510_v20 = vadd.f32 1e-05, %v509_v19  ;;  %v1388_v19 = vld [vmem:[#allocation7 + $0x10] sm:$0xff]  }
 0x604   :  { %1396 = vrsqrt.f32 %v510_v20  ;;  %v1389_v20 = vld [vmem:[#allocation7 + $0x18] sm:$0xff]  }
 0x60e   :  { %v1397_v21 = vpop.eup %1396 }
 0x60f   :  { %v512_v23 = vmul.f32 %v1397_v21, %v505_v10  ;;  %v1390_v21 = vld [vmem:[#allocation7 + $0x20] sm:$0xff]  }
 0x611   :  { %v519_v25 = vmul.f32 %v1060_v22, %v512_v23  ;;  %v1391_v22 = vld [vmem:[#allocation7 + $0x28] sm:$0xff]   ;;  %v1392_v23 = vld [vmem:[#allocation7 + $0x30] sm:$0xff]  }
 0x613   :  { %v526_v26 = vadd.f32 %v1061_v24, %v519_v25  ;;  %v1393_v24 = vld [vmem:[#allocation7 + $0x38] sm:$0xff]  }
 0x615   :  { %v527_v27 = vpack.c.bf16 %v526_v26, %v526_v26 }
 0x617   :  { %1281 = vmatmul.mubr.bf16.vlgmr.msra.gmra.mrb[12].mxu0 %v527_v27 }
 0x618   :  { %1312 = vmatprep.mubr.msk.bf16.mxu0 %vm1502_vm0, %v1501_v0  ;;  %1305 = vmatpush3.bf16.msra.mxu0 %v1382_v47 }
 0x619   :  { %1306 = vmatprep.subr.bf16.mxu0 %v1501_v0 }
 0x61c   :  { %1307 = vmatpush3.bf16.msra.mxu0 %v1383_v48 }
 0x61d   :  { %1308 = vmatprep.subr.bf16.mxu0 %v1501_v0 }
 0x620   :  { %1309 = vmatpush3.bf16.msra.mxu0 %v1384_v59 }
 0x621   :  { %1310 = vmatprep.subr.bf16.mxu0 %v1501_v0 }
 0x624   :  { %1311 = vmatpush3.bf16.msra.mxu0 %v1385_v60 }
 0x6ea   :  { %v635_v29 = vpop.f32.mrb[12].mxu0 }
 0x6eb   :  { %v636_v30 = vadd.f32 %v1079_v28, %v635_v29  ;;  %v1282_v31 = vpop.f32.mrb[13].mxu0  ;;  %v1135_v29 = vld [vmem:[%s1886_s11 + $0x1] ss:$0 sm:$0xff]  ;;  %s1468_s11 = scalar_lea.vmem %s1021_s16, 128 }
 0x6ec   :  { %v638_v32 = vpop.f32.mrb[14].mxu0  ;;  %v1136_v31 = vld [vmem:[%s1887_s12 + $0x1] ss:$0 sm:$0xff]  ;;  %p1469_p10 = scmp.ne.s32.totalorder %s1021_s16, %s1468_s11  ;;  %p1474_p12 = scmp.lt.s32.totalorder %s1468_s11, %s1468_s11 }
 0x6ed   :  { %v1283_v33 = vpop.f32.mrb[15].mxu0  ;;  %v641_v34 = vadd.f32 %v636_v30, %v526_v26 }
 0x6ee   :  { %p1475_p13 = por %p1474_p12, %p1473_p11 }
 0x6ef   :  { %646 = vadd.xlane.f32.xlu0 %v641_v34 }
 0x6f0   :  { %p1476_p0 = pnand %p1475_p13, %p1469_p10 }
 0x77c   :  { %v647_v37 = vpop.xlane.xlu0 %646 }
 0x77d   :  { %v648_v38 = vmul.f32 0.0078125, %v647_v37 }
 0x77f   :  { %v649_v39 = vsub.f32 %v641_v34, %v648_v38 }
 0x781   :  { %v650_v40 = vmul.f32 %v649_v39, %v649_v39 }
 0x783   :  { %651 = vadd.xlane.f32.xlu1 %v650_v40 }
 0x810   :  { %v652_v49 = vpop.xlane.xlu1 %651 }
 0x811   :  { %v653_v50 = vmul.f32 0.0078125, %v652_v49 }
 0x813   :  { %v654_v51 = vadd.f32 1e-05, %v653_v50 }
 0x815   :  { %1398 = vrsqrt.f32 %v654_v51 }
 0x81f   :  { %v1399_v52 = vpop.eup %1398 }
 0x820   :  { %v656_v54 = vmul.f32 %v1399_v52, %v649_v39 }
 0x822   :  { %v663_v56 = vmul.f32 %v1090_v53, %v656_v54 }
 0x824   :  { %v670_v57 = vadd.f32 %v1091_v55, %v663_v56 }
 0x826   :  { %v671_v58 = vpack.c.bf16 %v670_v57, %v670_v57 }
 0x828   :  { %1301 = vmatmul.mubr.bf16.vlgmr.msra.gmra.mrb[4].mxu1 %v671_v58 }
 0x829   :  { %1332 = vmatprep.mubr.msk.bf16.mxu1 %vm1502_vm0, %v1501_v0  ;;  %1317 = vmatpush3.bf16.msra.mxu1 %v1386_v13 }
 0x82a   :  { %1318 = vmatprep.subr.bf16.mxu1 %v1501_v0 }
 0x82d   :  { %1319 = vmatpush3.bf16.msra.mxu1 %v1387_v14 }
 0x82e   :  { %1320 = vmatprep.subr.bf16.mxu1 %v1501_v0 }
 0x831   :  { %1321 = vmatpush3.bf16.msra.mxu1 %v1388_v19 }
 0x832   :  { %1322 = vmatprep.subr.bf16.mxu1 %v1501_v0 }
 0x835   :  { %1323 = vmatpush3.bf16.msra.mxu1 %v1389_v20 }
 0x836   :  { %1324 = vmatprep.subr.bf16.mxu1 %v1501_v0 }
 0x839   :  { %1325 = vmatpush3.bf16.msra.mxu1 %v1390_v21 }
 0x83a   :  { %1326 = vmatprep.subr.bf16.mxu1 %v1501_v0 }
 0x83d   :  { %1327 = vmatpush3.bf16.msra.mxu1 %v1391_v22 }
 0x83e   :  { %1328 = vmatprep.subr.bf16.mxu1 %v1501_v0 }
 0x841   :  { %1329 = vmatpush3.bf16.msra.mxu1 %v1392_v23 }
 0x842   :  { %1330 = vmatprep.subr.bf16.mxu1 %v1501_v0  ;;  %v1137_v0 = vld [vmem:[%s1889_s14] ss:$0 sm:$0xff] }
 0x845   :  { %1331 = vmatpush3.bf16.msra.mxu1 %v1393_v24 }
 0x8fb   :  { %v779_v62 = vpop.f32.mrb[4].mxu1 }
 0x8fc   :  { %v780_v63 = vadd.f32 %v1109_v61, %v779_v62  ;;  %v1302_v1 = vpop.f32.mrb[5].mxu1 }
 0x8fd   :  { %v782_v2 = vpop.f32.mrb[6].mxu1 }
 0x8fe   :  { %v785_v3 = vmax.f32 %v780_v63, 0.0  ;;  %v1303_v4 = vpop.f32.mrb[7].mxu1 }
 0x900   :  { %v786_v5 = vpack.c.bf16 %v785_v3, %v785_v3 }
 0x902   :  { %1313 = vmatmul.mubr.msk.bf16.vlgmr.msra.gmra.mrb[16].mxu0 %vm455_vm2, %v786_v5 }
 0x9d5   :  { %v865_v7 = vpop.f32.mrb[16].mxu0 }
 0x9d6   :  { %v866_v8 = vadd.f32 %v1127_v6, %v865_v7  ;;  %v1314_v9 = vpop.f32.mrb[17].mxu0 }
 0x9d7   :  { %v868_v10 = vpop.f32.mrb[18].mxu0 }
 0x9d8   :  { %v1315_v11 = vpop.f32.mrb[19].mxu0  ;;  %v871_v12 = vadd.f32 %v866_v8, %v670_v57 }
 0x9da   :  { %876 = vadd.xlane.f32.xlu0 %v871_v12 }
 0xa67   :  { %v877_v15 = vpop.xlane.xlu0 %876 }
 0xa68   :  { %v878_v16 = vmul.f32 0.0078125, %v877_v15 }
 0xa6a   :  { %v879_v17 = vsub.f32 %v871_v12, %v878_v16 }
 0xa6c   :  { %v880_v18 = vmul.f32 %v879_v17, %v879_v17 }
 0xa6e   :  { %881 = vadd.xlane.f32.xlu1 %v880_v18 }
 0xafb   :  { %v882_v25 = vpop.xlane.xlu1 %881 }
 0xafc   :  { %v883_v26 = vmul.f32 0.0078125, %v882_v25 }
 0xafe   :  { %v884_v27 = vadd.f32 1e-05, %v883_v26 }
 0xb00   :  { %1400 = vrsqrt.f32 %v884_v27 }
 0xb0a   :  { %v1401_v28 = vpop.eup %1400 }
 0xb0b   :  { %v886_v30 = vmul.f32 %v1401_v28, %v879_v17 }
 0xb0d   :  { %v893_v32 = vmul.f32 %v1135_v29, %v886_v30 }
 0xb0f   :  { %v900_v33 = vadd.f32 %v1136_v31, %v893_v32 }
 0xb11   :  { %v901_v34 = vpack.c.bf16 %v900_v33, %v900_v33 }
 0xb13   :  { %1333 = vmatmul.mubr.bf16.vlgmr.msra.gmra.mrb[8].mxu1 %v901_v34 }
 0xbe6   :  { %v1007_v35 = vpop.f32.mrb[8].mxu1 }
 0xbe7   :  { %v1008_v36 = vadd.f32 %v1137_v0, %v1007_v35  ;;  %v1334_v37 = vpop.f32.mrb[9].mxu1 }
 0xbe8   :  { %v1010_v38 = vpop.f32.mrb[10].mxu1 }
 0xbe9   :  { %1013 = vst [vmem:[#allocation8] sm:$0xff] %v1008_v36  ;;  %v1335_v39 = vpop.f32.mrb[11].mxu1 }
 0xbea   :  { %1479 = shalt.err (!%p1476_p0)
}
 0xbeb   :  { %s1480_s14 = scalar_lea.hbm %s1890_s15, 128 }
 0xbec   :  { %p1481_p1 = scmp.ne.s32.totalorder %s1890_s15, %s1480_s14  ;;  %p1484_p2 = scmp.lt.u32.totalorder %s1480_s14, %s1890_s15 }
 0xbee   :  { %p1486_p3 = pnand %p1484_p2, %p1481_p1 }
 0xbf0   :  { %1489 = shalt.err (!%p1486_p3)
}
 0xbf1   :  { %1023 = dma.vmem_to_hbm [thread:$0]  %s1021_s16, 128, %s1890_s15, [#allocation4]  }
 0xbf2   :  { %1494 = dma.done.wait [#allocation4], 128  }
 0xbf3   :  { %1495 = vsyncadd [#allocation4], 4294967168 }
 0xbf4   :  { %1027 = vsyncpa [#allocation3], 1 }
 0xbf5   :  { %1028 = vsyncpa [#allocation6], 1 }
 0xbf6   :  { %1029 = vsyncpa [#allocation4], 1 }

</bundles_post_ra>
